<compile_context>
chip_gen: v7x
topology: tpu7x:2x2x1
jax: 0.10.0
libtpu: 0.0.40
codegen_flags: <defaults>
</compile_context>

<pallas_src>
import functools

import jax
import jax.numpy as jnp
from jax.experimental import pallas as pl
from jax.experimental.pallas import tpu as pltpu


def _round_up(x, m):
    return ((x + m - 1) // m) * m


def _ffn_kernel(x_ref, w1_ref, b1_ref, w2_ref, b2_ref, o_ref, *, hidden_chunk):
    # x_ref : (C, tile_n)   channels on sublanes, pixels on lanes (lane-dense)
    # w1_ref: (hidden, C)   conv1 weight, native PyTorch (out, in) layout (resident)
    # b1_ref: (hidden, 1)   f32
    # w2_ref: (C, hidden)   conv2 weight, native (out, in) layout (resident)
    # b2_ref: (C, 1)        f32
    # o_ref : (C, tile_n)
    x = x_ref[...]                       # native dtype straight into the MXU
    hidden = w1_ref.shape[0]

    y = None
    for c0 in range(0, hidden, hidden_chunk):
        hc = min(hidden_chunk, hidden - c0)
        # h_chunk = relu(W1[c0:c1] @ X + b1[c0:c1])           -> (hc, tile_n)
        h = jnp.dot(w1_ref[c0:c0 + hc, :], x,
                    preferred_element_type=jnp.float32) + b1_ref[c0:c0 + hc, :]
        h = jnp.maximum(h, 0.0)          # ReLU
        # Dropout: identity at inference.
        # y += W2[:, c0:c1] @ h_chunk                           -> (C, tile_n), f32 acc
        part = jnp.dot(w2_ref[:, c0:c0 + hc], h.astype(w2_ref.dtype),
                       preferred_element_type=jnp.float32)
        y = part if y is None else y + part

    # Dropout: identity at inference.
    o_ref[...] = (y + b2_ref[...]).astype(o_ref.dtype)


def feedforward_pallas(x_nchw, w1, b1, w2, b2, *, tile_pixels=512, hidden_chunk=512):
    """x_nchw: (B, dim, H, W). w1: (hidden, dim), b1: (hidden,),
    w2: (dim, hidden), b2: (dim,)   (PyTorch Conv2d 1x1 weight layouts)."""
    B, C, H, W = x_nchw.shape
    hidden = w1.shape[0]
    assert w1.shape == (hidden, C) and w2.shape == (C, hidden)
    assert b1.shape == (hidden,) and b2.shape == (C,)

    n_pix = H * W
    # Lane-dense pixel tile: multiple of 128, clamped so tiny inputs aren't over-padded.
    tile_n = min(_round_up(tile_pixels, 128), _round_up(n_pix, 128))
    n_pix_padded = _round_up(n_pix, tile_n)

    # Free reshape (row-major contiguous): no NCHW <-> NHWC transpose passes.
    x_flat = x_nchw.reshape(B, C, n_pix)
    if n_pix_padded != n_pix:
        x_flat = jnp.pad(x_flat, ((0, 0), (0, 0), (0, n_pix_padded - n_pix)))
    n_tiles = n_pix_padded // tile_n

    # Biases as f32 column vectors, cast once here (not per grid step in the kernel).
    b1_col = b1.astype(jnp.float32).reshape(hidden, 1)
    b2_col = b2.astype(jnp.float32).reshape(C, 1)

    kernel = functools.partial(_ffn_kernel, hidden_chunk=min(hidden_chunk, hidden))

    out_flat = pl.pallas_call(
        kernel,
        out_shape=jax.ShapeDtypeStruct((B, C, n_pix_padded), x_nchw.dtype),
        grid_spec=pl.GridSpec(
            grid=(B, n_tiles),
            in_specs=[
                pl.BlockSpec((None, C, tile_n), lambda b, i: (b, 0, i)),  # x tile
                pl.BlockSpec((hidden, C), lambda b, i: (0, 0)),           # w1 (resident)
                pl.BlockSpec((hidden, 1), lambda b, i: (0, 0)),           # b1 (resident)
                pl.BlockSpec((C, hidden), lambda b, i: (0, 0)),           # w2 (resident)
                pl.BlockSpec((C, 1), lambda b, i: (0, 0)),                # b2 (resident)
            ],
            out_specs=pl.BlockSpec((None, C, tile_n), lambda b, i: (b, 0, i)),
        ),
        compiler_params=pltpu.CompilerParams(
            dimension_semantics=("parallel", "parallel"),
            vmem_limit_bytes=64 * 1024 * 1024,
        ),
    )(x_flat, w1, b1_col, w2, b2_col)

    if n_pix_padded != n_pix:
        out_flat = out_flat[:, :, :n_pix]
    return out_flat.reshape(B, C, H, W)


def feedforward_reference(x_nchw, w1, b1, w2, b2):
    """Pure-JAX reference (eval mode), directly on NCHW."""
    xf = x_nchw.astype(jnp.float32)
    h = (jnp.einsum("bchw,oc->bohw", xf, w1.astype(jnp.float32))
         + b1.astype(jnp.float32).reshape(1, -1, 1, 1))
    h = jnp.maximum(h, 0.0)
    y = (jnp.einsum("bkhw,ok->bohw", h, w2.astype(jnp.float32))
         + b2.astype(jnp.float32).reshape(1, -1, 1, 1))
    return y.astype(x_nchw.dtype)


if __name__ == "__main__":
    key = jax.random.PRNGKey(0)
    B, dim, H, W = 2, 4, 16, 16
    expansion = 4
    hidden = dim * expansion

    k_x, k_w1, k_b1, k_w2, k_b2 = jax.random.split(key, 5)
    x = jax.random.normal(k_x, (B, dim, H, W), dtype=jnp.float32)
    # Deterministic parameter init (Conv2d 1x1 weight shapes: (out, in))
    w1 = 0.1 * jax.random.normal(k_w1, (hidden, dim), dtype=jnp.float32)
    b1 = 0.1 * jax.random.normal(k_b1, (hidden,), dtype=jnp.float32)
    w2 = 0.1 * jax.random.normal(k_w2, (dim, hidden), dtype=jnp.float32)
    b2 = 0.1 * jax.random.normal(k_b2, (dim,), dtype=jnp.float32)

    out = feedforward_pallas(x, w1, b1, w2, b2)
    out = jax.block_until_ready(out)

    ref = feedforward_reference(x, w1, b1, w2, b2)
    assert out.shape == (B, dim, H, W)
    assert jnp.allclose(out, ref, atol=2e-5, rtol=2e-5), "mismatch vs reference"

    print("KERNEL_OK")
</pallas_src>

<mosaic_0001>
module attributes {stable_mosaic.version = 11 : i64} {
  func.func @_ffn_kernel(%arg0: i32, %arg1: i32, %arg2: memref<1x4x256xf32, #tpu.memory_space<vmem>>, %arg3: memref<16x4xf32, #tpu.memory_space<vmem>>, %arg4: memref<16x1xf32, #tpu.memory_space<vmem>>, %arg5: memref<4x16xf32, #tpu.memory_space<vmem>>, %arg6: memref<4x1xf32, #tpu.memory_space<vmem>>, %arg7: memref<1x4x256xf32, #tpu.memory_space<vmem>>) attributes {dimension_semantics = [#tpu.dimension_semantics<parallel>, #tpu.dimension_semantics<parallel>], iteration_bounds = array<i64: 2, 1>, scalar_prefetch = 0 : i64, scratch_operands = 0 : i64, tpu.core_type = #tpu.core_type<tc>, window_params = [{transform_indices = @transform_0, window_bounds = array<i64: 1, 4, 256>}, {pipeline_mode = #tpu.pipeline_mode<synchronous>, transform_indices = @transform_1, window_bounds = array<i64: 16, 4>}, {pipeline_mode = #tpu.pipeline_mode<synchronous>, transform_indices = @transform_2, window_bounds = array<i64: 16, 1>}, {pipeline_mode = #tpu.pipeline_mode<synchronous>, transform_indices = @transform_3, window_bounds = array<i64: 4, 16>}, {pipeline_mode = #tpu.pipeline_mode<synchronous>, transform_indices = @transform_4, window_bounds = array<i64: 4, 1>}, {transform_indices = @transform_5, window_bounds = array<i64: 1, 4, 256>}]} {
    %c0 = arith.constant 0 : index
    %c0_0 = arith.constant 0 : index
    %c0_1 = arith.constant 0 : index
    %0 = vector.load %arg2[%c0, %c0_0, %c0_1] : memref<1x4x256xf32, #tpu.memory_space<vmem>>, vector<1x4x256xf32>
    %1 = vector.shape_cast %0 : vector<1x4x256xf32> to vector<4x256xf32>
    %c0_2 = arith.constant 0 : index
    %c0_3 = arith.constant 0 : index
    %2 = vector.load %arg3[%c0_2, %c0_3] : memref<16x4xf32, #tpu.memory_space<vmem>>, vector<16x4xf32>
    %cst = arith.constant dense<0.000000e+00> : vector<16x256xf32>
    %3 = tpu.matmul %2, %1, %cst {dimension_numbers = #tpu.dot_dimension_numbers<[1], [0], [0], [1], [0, 0, 1, 1], [], []>} : vector<16x4xf32>, vector<4x256xf32>, vector<16x256xf32> -> vector<16x256xf32>
    %c0_4 = arith.constant 0 : index
    %c0_5 = arith.constant 0 : index
    %4 = vector.load %arg4[%c0_4, %c0_5] : memref<16x1xf32, #tpu.memory_space<vmem>>, vector<16x1xf32>
    %5 = vector.broadcast %4 : vector<16x1xf32> to vector<16x256xf32>
    %6 = arith.addf %3, %5 : vector<16x256xf32>
    %cst_6 = arith.constant 0.000000e+00 : f32
    %7 = vector.broadcast %cst_6 : f32 to vector<16x256xf32>
    %8 = arith.maximumf %6, %7 : vector<16x256xf32>
    %c0_7 = arith.constant 0 : index
    %c0_8 = arith.constant 0 : index
    %9 = vector.load %arg5[%c0_7, %c0_8] : memref<4x16xf32, #tpu.memory_space<vmem>>, vector<4x16xf32>
    %cst_9 = arith.constant dense<0.000000e+00> : vector<4x256xf32>
    %10 = tpu.matmul %9, %8, %cst_9 {dimension_numbers = #tpu.dot_dimension_numbers<[1], [0], [0], [1], [0, 0, 1, 1], [], []>} : vector<4x16xf32>, vector<16x256xf32>, vector<4x256xf32> -> vector<4x256xf32>
    %c0_10 = arith.constant 0 : index
    %c0_11 = arith.constant 0 : index
    %11 = vector.load %arg6[%c0_10, %c0_11] : memref<4x1xf32, #tpu.memory_space<vmem>>, vector<4x1xf32>
    %12 = vector.broadcast %11 : vector<4x1xf32> to vector<4x256xf32>
    %13 = arith.addf %10, %12 : vector<4x256xf32>
    %c0_12 = arith.constant 0 : index
    %c0_13 = arith.constant 0 : index
    %c0_14 = arith.constant 0 : index
    %14 = vector.load %arg7[%c0_12, %c0_13, %c0_14] : memref<1x4x256xf32, #tpu.memory_space<vmem>>, vector<1x4x256xf32>
    %15 = vector.shape_cast %14 : vector<1x4x256xf32> to vector<4x256xf32>
    %16 = vector.shape_cast %13 : vector<4x256xf32> to vector<1x4x256xf32>
    tpu.vector_store %arg7[%c0_12, %c0_13, %c0_14], %16 {strides = array<i32>} : memref<1x4x256xf32, #tpu.memory_space<vmem>>, vector<1x4x256xf32>,
    return
  }
  func.func @transform_0(%arg0: i32, %arg1: i32) -> (i32, i32, i32) {
    %c0_i32 = arith.constant 0 : i32
    %c0_i32_0 = arith.constant 0 : i32
    return %arg0, %c0_i32, %arg1 : i32, i32, i32
  }
  func.func @transform_1(%arg0: i32, %arg1: i32) -> (i32, i32) {
    %c0_i32 = arith.constant 0 : i32
    %c0_i32_0 = arith.constant 0 : i32
    %c0_i32_1 = arith.constant 0 : i32
    return %c0_i32, %c0_i32_0 : i32, i32
  }
  func.func @transform_2(%arg0: i32, %arg1: i32) -> (i32, i32) {
    %c0_i32 = arith.constant 0 : i32
    %c0_i32_0 = arith.constant 0 : i32
    %c0_i32_1 = arith.constant 0 : i32
    return %c0_i32, %c0_i32_0 : i32, i32
  }
  func.func @transform_3(%arg0: i32, %arg1: i32) -> (i32, i32) {
    %c0_i32 = arith.constant 0 : i32
    %c0_i32_0 = arith.constant 0 : i32
    %c0_i32_1 = arith.constant 0 : i32
    return %c0_i32, %c0_i32_0 : i32, i32
  }
  func.func @transform_4(%arg0: i32, %arg1: i32) -> (i32, i32) {
    %c0_i32 = arith.constant 0 : i32
    %c0_i32_0 = arith.constant 0 : i32
    %c0_i32_1 = arith.constant 0 : i32
    return %c0_i32, %c0_i32_0 : i32, i32
  }
  func.func @transform_5(%arg0: i32, %arg1: i32) -> (i32, i32, i32) {
    %c0_i32 = arith.constant 0 : i32
    %c0_i32_0 = arith.constant 0 : i32
    return %arg0, %c0_i32, %arg1 : i32, i32, i32
  }
}

</mosaic_0001>

<bundles_post_ra>
// kernel: tpu_custom_call.1
= control target key start
LH: loop header
LB: loop body
LE: loop exit
PB: predicated region body
PF: predicated region fallthrough
CT: control target
= control target key end

     0   :  { %10 = vsyncpa [#allocation3], 0  ;;  %s1374_s0 = inlined_call_operand.hbm [shape: f32[2,4,256], index: 0, kind: input, shape index: {}]   ;;  %s1375_s1 = inlined_call_operand.hbm [shape: f32[16,4], index: 1, kind: input, shape index: {}]   ;;  %s1376_s2 = inlined_call_operand.hbm [shape: f32[16,1], index: 2, kind: input, shape index: {}]   ;;  %s1377_s3 = inlined_call_operand.hbm [shape: f32[4,16], index: 3, kind: input, shape index: {}]   ;;  %s1378_s4 = inlined_call_operand.hbm [shape: f32[4,1], index: 4, kind: input, shape index: {}]   ;;  %s1379_s5 = inlined_call_operand.hbm [shape: f32[2,4,256], index: 5, kind: output, shape index: {}]  }
   0x1   :  { %12 = vsyncpa [#allocation3 + $0x1], 0 }
   0x2   :  { %13 = vsyncpa [#allocation6], 0 }
   0x3   :  { %14 = vsyncpa [#allocation9], 0 }
   0x4   :  { %15 = vsyncpa [#allocation4], 0 }
   0x5   :  { %17 = vsyncpa [#allocation4 + $0x1], 0  ;;  %s1069_s18 = smov 0   ;;  %s1071_s19 = smov 0  }
   0x6   :  { %s1073_s20 = smov 0   ;;  %s1075_s21 = smov 0  }
   0x7   :  { %s1077_s22 = smov 0   ;;  %s1079_s23 = smov 0  }
   0x8 LB: > { %s651_s24 = sadd.s32 4294967295, %s1027_s23   ;;  %p653_p0 = scmp.ge.s32.totalorder %s1027_s23, 1  ;;  %s1027_s23 = sphi %s1079_s23, %s23_s23   ;;  %s1023_s22 = sphi %s1077_s22, %s1403_s22   ;;  %s1019_s21 = sphi %s1075_s21, %s1402_s21   ;;  %s1015_s20 = sphi %s1073_s20, %s1401_s20   ;;  %s1011_s19 = sphi %s1071_s19, %s1400_s19   ;;  %s1007_s18 = sphi %s1069_s18, %s1399_s18  }
   0x9   : > { %p1103_p1 = scmp.eq.s32.totalorder %s651_s24, 0  ;;  %p180_p2 = scmp.lt.s32.totalorder %s1027_s23, 3 }
   0xa   : > { %s1029_s27 = smov [#allocation5]   ;;  %s1030_s30 = smov [#allocation8]  }
   0xb   : > { %s1384_s25 = scalar_select %p1103_p1, 1, 0 }
   0xc   : > { %p1108_p3 = pnand %p653_p0, %p180_p2  ;;  %s192_s28 = sshll.u32 %s1029_s27, 4  ;;  %s1112_s28 = int_to_ptr.vmem [resolvable:$true] %s192_s28 }
   0xd   : > { %s219_s6 = sshll.u32 %s1030_s30, 4  ;;  %s1031_s7 = smov [#allocation7]   ;;  %s1123_s6 = int_to_ptr.vmem [resolvable:$true] %s219_s6 }
   0xe   : > { %s1385_s26 = scalar_select %p1108_p3, 1, 0 }
   0xf   : > { %p705_p4 = pneg %p1108_p3  ;;  %s1125_s8 = sshll.u32 %s1031_s7, 4  ;;  %s206_s8 = int_to_ptr.vmem [resolvable:$true] %s1125_s8 }
  0x10   : > { %s795_s11 = scalar_lea.hbm %s1375_s1, 256 }
  0x11   : > { %p1119_p6 = pnand %p705_p4, %p1103_p1  ;;  %p796_p7 = scmp.ne.s32.totalorder %s1375_s1, %s795_s11 }
  0x12   : > { %p802_p11 = scmp.lt.u32.totalorder %s795_s11, %s1375_s1 }
  0x13   : > { %p1135_p8 = pneg %p1119_p6 }
  0x15   : > { %p798_p9 = pnand %p1135_p8, %p796_p7 }
  0x17   : > { %p799_p10 = pneg %p798_p9 }
  0x19   : > { %p804_p12 = pnand %p802_p11, %p799_p10 }
  0x1b   : > { %807 = shalt.err (!%p804_p12)
}
  0x1c   : > { %s808_s17 = scalar_lea.vmem %s1112_s28, 256  ;;  %p816_p4 = scmp.lt.s32.totalorder %s1112_s28, %s1112_s28 }
  0x1d   : > { %p809_p13 = scmp.ne.s32.totalorder %s1112_s28, %s808_s17  ;;  %p817_p5 = scmp.lt.s32.totalorder %s808_s17, %s808_s17 }
  0x1f   : > { %p811_p0 = pnand %p809_p13, %p1135_p8  ;;  %p818_p7 = por %p817_p5, %p816_p4 }
  0x21   : > { %p812_p2 = pneg %p811_p0 }
  0x23   : > { %p819_p9 = pnand %p818_p7, %p812_p2 }
  0x25   : > { %822 = shalt.err (!%p819_p9)
}
  0x26   : > { %s1032_s27 = smov 128   ;;  %s1033_s30 = smov 8  }
  0x27   : > { %708 = dma.hbm_to_vmem [thread:$0]  (!%p1119_p6), %s1375_s1, 256, %s1112_s28, [#allocation6], %s1032_s27, %s1032_s27, %s1033_s30  }
  0x28   : > { %s823_s12 = scalar_lea.hbm %s1377_s3, 64 }
  0x29   : > { %p824_p5 = scmp.ne.s32.totalorder %s1377_s3, %s823_s12  ;;  %p830_p12 = scmp.lt.u32.totalorder %s823_s12, %s1377_s3 }
  0x2b   : > { %p826_p10 = pnand %p824_p5, %p1135_p8 }
  0x2d   : > { %p827_p11 = pneg %p826_p10 }
  0x2f   : > { %p832_p13 = pnand %p830_p12, %p827_p11 }
  0x31   : > { %835 = shalt.err (!%p832_p13)
}
  0x32   : > { %s836_s28 = scalar_lea.vmem %s1123_s6, 64  ;;  %p844_p7 = scmp.lt.s32.totalorder %s1123_s6, %s1123_s6 }
  0x33   : > { %p837_p0 = scmp.ne.s32.totalorder %s1123_s6, %s836_s28  ;;  %p845_p9 = scmp.lt.s32.totalorder %s836_s28, %s836_s28 }
  0x35   : > { %p839_p2 = pnand %p837_p0, %p1135_p8  ;;  %p846_p5 = por %p845_p9, %p844_p7 }
  0x37   : > { %p840_p4 = pneg %p839_p2 }
  0x39   : > { %p847_p10 = pnand %p846_p5, %p840_p4 }
  0x3b   : > { %850 = shalt.err (!%p847_p10)
}
  0x3c   : > { %714 = dma.hbm_to_vmem [thread:$0]  (!%p1119_p6), %s1377_s3, 64, %s1123_s6, [#allocation9]  }
  0x3d   : > { %s851_s12 = scalar_lea.hbm %s1376_s2, 256 }
  0x3e   : > { %p852_p11 = scmp.ne.s32.totalorder %s1376_s2, %s851_s12  ;;  %p858_p0 = scmp.lt.u32.totalorder %s851_s12, %s1376_s2 }
  0x40   : > { %p854_p12 = pnand %p852_p11, %p1135_p8 }
  0x42   : > { %p855_p13 = pneg %p854_p12 }
  0x44   : > { %p860_p2 = pnand %p858_p0, %p855_p13 }
  0x46   : > { %863 = shalt.err (!%p860_p2)
}
  0x47   : > { %s864_s28 = scalar_lea.vmem %s206_s8, 256  ;;  %p872_p5 = scmp.lt.s32.totalorder %s206_s8, %s206_s8 }
  0x48   : > { %p865_p4 = scmp.ne.s32.totalorder %s206_s8, %s864_s28  ;;  %p873_p10 = scmp.lt.s32.totalorder %s864_s28, %s864_s28 }
  0x4a   : > { %p867_p7 = pnand %p865_p4, %p1135_p8  ;;  %p874_p3 = por %p873_p10, %p872_p5 }
  0x4c   : > { %p868_p9 = pneg %p867_p7 }
  0x4e   : > { %p875_p1 = pnand %p874_p3, %p868_p9 }
  0x50   : > { %878 = shalt.err (!%p875_p1)
}
  0x51   : > { %711 = dma.hbm_to_vmem [thread:$0]  (!%p1119_p6), %s1376_s2, 256, %s206_s8, [#allocation6], %s1032_s27, %s1032_s27, %s1033_s30  }
  0x52   : > { %s1034_s9 = smov [#allocation10]   ;;  %s879_s13 = scalar_lea.hbm %s1378_s4, 64 }
  0x53   : > { %s230_s10 = sshll.u32 %s1034_s9, 4  ;;  %p880_p1 = scmp.ne.s32.totalorder %s1378_s4, %s879_s13  ;;  %s231_s10 = int_to_ptr.vmem [resolvable:$true] %s230_s10 }
  0x54   : > { %p886_p12 = scmp.lt.u32.totalorder %s879_s13, %s1378_s4 }
  0x55   : > { %p882_p3 = pnand %p880_p1, %p1135_p8 }
  0x57   : > { %p883_p11 = pneg %p882_p3 }
  0x59   : > { %p888_p13 = pnand %p886_p12, %p883_p11 }
  0x5b   : > { %891 = shalt.err (!%p888_p13)
}
  0x5c   : > { %s892_s8 = scalar_lea.vmem %s231_s10, 64  ;;  %p900_p7 = scmp.lt.s32.totalorder %s231_s10, %s231_s10 }
  0x5d   : > { %p893_p0 = scmp.ne.s32.totalorder %s231_s10, %s892_s8  ;;  %p901_p9 = scmp.lt.s32.totalorder %s892_s8, %s892_s8 }
  0x5f   : > { %p895_p2 = pnand %p893_p0, %p1135_p8  ;;  %p902_p5 = por %p901_p9, %p900_p7 }
  0x61   : > { %p896_p4 = pneg %p895_p2 }
  0x63   : > { %p903_p10 = pnand %p902_p5, %p896_p4 }
  0x65   : > { %906 = shalt.err (!%p903_p10)
}
  0x66   : > { %717 = dma.hbm_to_vmem [thread:$0]  (!%p1119_p6), %s1378_s4, 64, %s231_s10, [#allocation9]  }
  0x67   : > { %s652_s14 = sadd.s32 4294967294, %s1027_s23   ;;  %s35_s6 = sadd.s32 1, %s1023_s22 }
  0x68   : > { %p37_p8 = scmp.ge.s32.totalorder %s35_s6, 2  ;;  %s44_s29 = sadd.s32 1, %s1015_s20 }
  0x69   : > { %p51_p1 = scmp.ne.s32.totalorder %s1015_s20, %s1011_s19  ;;  %p52_p3 = scmp.eq.s32.totalorder %s1027_s23, 0 }
  0x6a   : > { %s1405_s6 = smov (%p37_p8, %s35_s6), 0  ;;  %p57_p12 = scmp.ne.s32.totalorder %s1011_s19, %s1007_s18 }
  0x6b   : > { %p1230_p11 = por %p52_p3, %p51_p1  ;;  %s39_s9 = ssub.s32 %s1023_s22, %s1405_s6 }
  0x6c   : > { %p167_p6 = scmp.eq.s32.totalorder %s651_s24, 1  ;;  %p42_p13 = scmp.eq.s32.totalorder %s39_s9, 0 }
  0x6d   : > { %p1389_p0 = scmp.ne.s32.totalorder %s1384_s25, 0  ;;  %p173_p7 = scmp.eq.s32.totalorder %s652_s14, 1 }
  0x6e   : > { %p1246_p4 = por %p167_p6, %p51_p1  ;;  %p730_p5 = scmp.lt.s32.totalorder %s1027_s23, 2 }
  0x6f   : > { %p1242_p2 = por %p1389_p0, %p57_p12  ;;  %p1253_p9 = por %p173_p7, %p57_p12 }
  0x70   : > { %s1391_s11 = scalar_select %p1246_p4, 1, 0 }
  0x71   : > { %s1251_s12 = scalar_select %p42_p13, %s1015_s20, %s44_s29  }
  0x72   : > { %s1392_s13 = scalar_select %p1253_p9, 1, 0 }
  0x73   : > { %s241_s15 = sand.u32 1, %s1015_s20   ;;  %s679_s24 = sshll.u32 %s1023_s22, 7 }
  0x74   : > { %s659_s16 = sshll.u32 %s241_s15, 3  ;;  %s1263_s8 = scalar_lea.hbm %s1374_s0, %s679_s24 }
  0x75   : > { %s245_s27 = scalar_lea.vmem [#allocation2], %s659_s16  ;;  %p1267_p10 = pnand %p730_p5, %p1230_p11 }
  0x76   : > { %s255_s30 = sshll.u32 %s245_s27, 4  ;;  %s242_s29 = scalar_lea.sflag [#allocation3], %s241_s15  ;;  %s1271_s30 = int_to_ptr.vmem [resolvable:$true] %s255_s30 }
  0x77   : > { %s907_s9 = scalar_lea.hbm %s1263_s8, 128  ;;  %p909_p1 = pneg %p1267_p10 }
  0x78   : > { %p908_p8 = scmp.ne.s32.totalorder %s1263_s8, %s907_s9  ;;  %s912_s7 = scalar_lea.hbm %s1374_s0, 256 }
  0x79   : > { %p913_p11 = scmp.lt.u32.totalorder %s1263_s8, %s1374_s0  ;;  %p914_p6 = scmp.lt.u32.totalorder %s912_s7, %s907_s9 }
  0x7a   : > { %p910_p3 = pnand %p909_p1, %p908_p8  ;;  %p916_p0 = scmp.lt.u32.totalorder %s907_s9, %s1263_s8 }
  0x7b   : > { %p915_p13 = por %p914_p6, %p913_p11 }
  0x7c   : > { %p911_p12 = pneg %p910_p3 }
  0x7d   : > { %p917_p7 = por %p916_p0, %p915_p13 }
  0x7f   : > { %p918_p5 = pnand %p917_p7, %p911_p12 }
  0x81   : > { %921 = shalt.err (!%p918_p5)
}
  0x82   : > { %s922_s15 = scalar_lea.vmem %s1271_s30, 128  ;;  %s1035_s27 = smov [#allocation2]  }
  0x83   : > { %p923_p8 = scmp.ne.s32.totalorder %s1271_s30, %s922_s15  ;;  %s927_s24 = sshll.u32 %s1035_s27, 4  ;;  %s928_s24 = int_to_ptr.vmem [resolvable:$false] %s927_s24 }
  0x84   : > { %s929_s16 = scalar_lea.vmem %s928_s24, 256  ;;  %p930_p4 = scmp.lt.s32.totalorder %s1271_s30, %s928_s24 }
  0x85   : > { %p925_p3 = pnand %p923_p8, %p909_p1  ;;  %p931_p11 = scmp.lt.s32.totalorder %s929_s16, %s922_s15 }
  0x87   : > { %p926_p9 = pneg %p925_p3  ;;  %p932_p6 = por %p931_p11, %p930_p4 }
  0x89   : > { %p933_p13 = pnand %p932_p6, %p926_p9 }
  0x8b   : > { %936 = shalt.err (!%p933_p13)
}
  0x8c   : > { %721 = dma.hbm_to_vmem [thread:$0]  (!%p1267_p10), %s1263_s8, 128, %s1271_s30, %s242_s29  }
  0x8d   : > { %p1394_p12 = scmp.ne.s32.totalorder %s1385_s26, 0 }
  0x8e   : > { %s1301_s9 = sand.u32 (!%p1394_p12), 1, %s1011_s19  }
  0x8f   : > { %264 = sbr.rel (%p1394_p12) target bundleno = 619 (0x26b), region = 40  ;;  %s663_s7 = sshll.u32 (!%p1394_p12), %s1301_s9, 3 }
  0x90   : > { %s267_s17 = scalar_lea.sflag (!%p1394_p12), [#allocation3], %s1301_s9  ;;  %s270_s28 = scalar_lea.vmem (!%p1394_p12), [#allocation2], %s663_s7 }
  0x96   : > { %990 = dma.done.wait (%p1242_p2), %s267_s17, 128  }
  0x97   : > { %992 = vsyncadd (%p1242_p2), %s267_s17, 4294967168  ;;  %p1395_p4 = scmp.ne.s32.totalorder %s1384_s25, 0 }
  0x99   : > { %994 = dma.done.wait (%p1395_p4), [#allocation6], 512  }
  0x9a   : > { %996 = vsyncadd (%p1395_p4), [#allocation6], 4294966784 }
  0x9b   : > { %998 = dma.done.wait (%p1395_p4), [#allocation9], 128  }
  0x9c   : > { %1000 = vsyncadd (%p1395_p4), [#allocation9], 4294967168  ;;  %v1036_v0 = vmov 0.0   ;;  %v1037_v1 = vmov 0   ;;  %v315_v2 = vld [vmem:[%s270_s28] sm:$0xff]  ;;  %vm339_vm0 = vcmask 1043456  }
  0x9d   : > { %408 = vmatprep.mubr.f32.mxu0 %v1036_v0  ;;  %792 = vset.pattern.permute.xlu0 %v1037_v1  ;;  %v331_v3 = vcombine.high %v315_v2, %v315_v2  ;;  %v318_v4 = vld [vmem:[#allocation7] sm:$0xff]  ;;  %v316_v5 = vld [vmem:[#allocation5] sm:$0xff]  ;;  %vm332_vm1 = vcmask 31744   ;;  %v319_v6 = vld [vmem:[#allocation7 + $0x8] sm:$0xff]  ;;  %vm432_vm2 = vcmask 130048   ;;  %s680_s25 = sshll.u32 %s1019_s21, 7 }
  0x9e   : > { %500 = vmatprep.mubr.f32.mxu1 %v1036_v0  ;;  %793 = vset.pattern.permute.xlu1 %v1037_v1  ;;  %v317_v7 = vld [vmem:[#allocation5 + $0x8] sm:$0xff]  ;;  %v426_v8 = vld [vmem:[#allocation10] sm:$0xf]  ;;  %v425_v25 = vld [vmem:[#allocation8] sm:$0xf]  ;;  %s312_s26 = scalar_lea.vmem [#allocation11], %s663_s7  ;;  %s1325_s14 = scalar_lea.hbm %s1379_s5, %s680_s25 }
  0x9f   : > { %322 = vperm.xlu0 %792, %v318_v4   ;;  %669 = vmatprep.subr.msk.mxu0 %vm339_vm0, %v331_v3  ;;  %s529_s10 = sshll.u32 %s312_s26, 4  ;;  %s513_s29 = scalar_lea.sflag [#allocation4], %s1301_s9  ;;  %s1327_s10 = int_to_ptr.vmem [resolvable:$true] %s529_s10 }
  0xa0   : > { %670 = vmatpush1.msk.msra.mxu0 %vm339_vm0, %v315_v2  ;;  %429 = vperm.xlu1 %793, %v426_v8   ;;  %s937_s15 = scalar_lea.vmem %s1327_s10, 128  ;;  %p1396_p9 = scmp.ne.s32.totalorder %s1391_s11, 0 }
  0xa1   : > { %671 = vmatmul.mubr.msk.f32.vlgmr.msra.gmra.mrb[0].mxu0 %vm332_vm1, %v316_v5  ;;  %p938_p2 = scmp.ne.s32.totalorder %s1327_s10, %s937_s15  ;;  %s1038_s21 = smov [#allocation11]  }
  0xa2   : > { %414 = vmatprep.mubr.f32.mxu0 %v1036_v0  ;;  %s941_s27 = sshll.u32 %s1038_s21, 4  ;;  %s942_s27 = int_to_ptr.vmem [resolvable:$false] %s941_s27 }
  0xa3   : > { %327 = vperm.xlu0 %792, %v319_v6   ;;  %p939_p10 = pnand %p938_p2, %p1396_p9  ;;  %s943_s24 = scalar_lea.vmem %s942_s27, 256 }
  0xa4   : > { %p944_p0 = scmp.lt.s32.totalorder %s1327_s10, %s942_s27  ;;  %p945_p7 = scmp.lt.s32.totalorder %s943_s24, %s937_s15 }
  0xa5   : > { %672 = vmatmul.mubr.msk.f32.gmra.mrb[2].mxu0 %vm332_vm1, %v317_v7  ;;  %p940_p1 = pneg %p939_p10 }
  0xa6   : > { %p946_p5 = por %p945_p7, %p944_p0 }
  0xa8   : > { %p947_p8 = pnand %p946_p5, %p940_p1 }
 0x11e   : > { %v323_v9 = vpop.permute.xlu0 %322 }
 0x11f   : > { %v430_v26 = vpop.permute.xlu1 %429 }
 0x122   : > { %v328_v13 = vpop.permute.xlu0 %327 }
 0x174   : > { %v410_v10 = vpop.f32.mrb[0].mxu0 }
 0x175   : > { %v412_v11 = vpop.f32.mrb[1].mxu0  ;;  %v411_v12 = vadd.f32 %v410_v10, %v323_v9 }
 0x176   : > { %v413_v14 = vadd.f32 %v412_v11, %v323_v9 }
 0x177   : > { %v421_v19 = vmax.f32 %v411_v12, 0.0 }
 0x178   : > { %v416_v15 = vpop.f32.mrb[2].mxu0  ;;  %v422_v21 = vmax.f32 %v413_v14, 0.0 }
 0x179   : > { %v417_v16 = vadd.f32 %v416_v15, %v328_v13  ;;  %v418_v17 = vpop.f32.mrb[3].mxu0 }
 0x17a   : > { %v419_v18 = vadd.f32 %v418_v17, %v328_v13 }
 0x17b   : > { %v423_v20 = vmax.f32 %v417_v16, 0.0 }
 0x17c   : > { %v424_v22 = vmax.f32 %v419_v18, 0.0 }
 0x17d   : > { %v683_v23 = vpack.c.bf16 %v423_v20, %v421_v19 }
 0x17e   : > { %v681_v24 = vpack.c.bf16 %v424_v22, %v422_v21 }
 0x180   : > { %682 = vmatprep.subr.bf16.mxu1 %v681_v24 }
 0x181   : > { %684 = vmatpush1.bf16.msra.mxu1 %v683_v23 }
 0x184   : > { %673 = vmatmul.mubr.msk.f32.vlgmr.msra.gmra.mrb[0].mxu1 %vm432_vm2, %v425_v25 }
 0x257   : > { %v502_v27 = vpop.f32.mrb[0].mxu1 }
 0x258   : > { %v503_v28 = vadd.f32 %v502_v27, %v430_v26  ;;  %v504_v29 = vpop.f32.mrb[1].mxu1 }
 0x259   : > { %v505_v30 = vadd.f32 %v504_v29, %v430_v26 }
 0x25b   : > { %v509_v31 = vcombine.low %v503_v28, %v505_v30 }
 0x25d   : > { %511 = vst [vmem:[%s312_s26] sm:$0xff] %v509_v31 }
 0x25e   : > { %950 = shalt.err (!%p947_p8)
}
 0x25f   : > { %s951_s16 = scalar_lea.hbm %s1325_s14, 128  ;;  %s955_s17 = scalar_lea.hbm %s1379_s5, 256 }
 0x260   : > { %p952_p3 = scmp.ne.s32.totalorder %s1325_s14, %s951_s16  ;;  %p956_p13 = scmp.lt.u32.totalorder %s1325_s14, %s1379_s5 }
 0x261   : > { %p957_p12 = scmp.lt.u32.totalorder %s955_s17, %s951_s16  ;;  %p959_p2 = scmp.lt.u32.totalorder %s951_s16, %s1325_s14 }
 0x262   : > { %p953_p11 = pnand %p952_p3, %p1396_p9 }
 0x263   : > { %p958_p4 = por %p957_p12, %p956_p13 }
 0x264   : > { %p954_p6 = pneg %p953_p11 }
 0x265   : > { %p960_p10 = por %p959_p2, %p958_p4 }
 0x267   : > { %p961_p1 = pnand %p960_p10, %p954_p6 }
 0x269   : > { %964 = shalt.err (!%p961_p1)
}
 0x26a   : > { %703 = dma.vmem_to_hbm [thread:$0]  (%p1396_p9), %s1327_s10, 128, %s1325_s14, %s513_s29  }
 0x26b PF: > { %s541_s26 = sand.u32 1, %s1007_s18   ;;  %p1397_p0 = scmp.ne.s32.totalorder %s1392_s13, 0 }
 0x26c   : > { %p1398_p7 = scmp.ge.s32.totalorder %s1027_s23, 2  ;;  %s542_s8 = scalar_lea.sflag [#allocation4], %s541_s26 }
 0x26e   : > { %p723_p5 = pnand %p1398_p7, %p1397_p0 }
 0x270   : > { %1002 = dma.done.wait (!%p723_p5), %s542_s8, 128  }
 0x271   : > { %1004 = vsyncadd (!%p723_p5), %s542_s8, 4294967168  ;;  %s23_s23 = sadd.s32 1, %s1027_s23   ;;  %s1399_s18 = smov %s1011_s19 }
 0x272   : > { %p20_p8 = scmp.ge.s32.totalorder %s23_s23, 4   ;;  %s1400_s19 = smov %s1015_s20 }
 0x273   : > { %s1401_s20 = smov %s1251_s12  ;;  %s1402_s21 = smov %s1023_s22 }
 0x274   : > { %s1403_s22 = smov %s1405_s6  ;;  %22 = sbr.rel (!%p20_p8) target bundleno = 8 (0x8), region = 101 }
 0x27b   :  { %547 = vsyncpa [#allocation3], 1 }
 0x27c   :  { %549 = vsyncpa [#allocation3 + $0x1], 1 }
 0x27d   :  { %550 = vsyncpa [#allocation6], 1 }
 0x27e   :  { %551 = vsyncpa [#allocation9], 1 }
 0x27f   :  { %552 = vsyncpa [#allocation4], 1 }
 0x280   :  { %554 = vsyncpa [#allocation4 + $0x1], 1 }

</bundles_post_ra>
